<compile_context>
chip_gen: v5e
topology: v5e:2x2
jax: 0.10.0
libtpu: 0.0.40
codegen_flags: <defaults>
</compile_context>

<pallas_src>
import numpy as np
import jax
import jax.numpy as jnp
from jax.experimental import pallas as pl
from jax.experimental.pallas import tpu as pltpu

# ---------------------------------------------------------------------------
# Model hyper-parameters (small, consistent with the module's constructor).
# ---------------------------------------------------------------------------
DIM_PRIOR  = 16          # length_prior = 4
DIM        = 64          # length       = 8   (upsample 4x4 -> 8x8)
WIDTH      = 32
DUST_CONST = 1e-6
SKIP_CONST = 0.3
BATCH      = 4
BN_EPS     = 1e-5

LENGTH_PRIOR = int(DIM_PRIOR ** 0.5)
LENGTH       = int(DIM ** 0.5)

# Packed parameter slab layout: (SLAB_ROWS, SLAB_COLS) float32
ROW_WF    = 0                   # 64 rows : fused [skip*resize | W1]  (64, 160)
ROW_W2    = 4 * DIM_PRIOR       # 32 rows : W2 in cols 0:WIDTH
ROW_W3    = ROW_W2 + WIDTH      # 32 rows : W3 in cols 0:2*DIM
ROW_PV    = ROW_W3 + WIDTH      # 8 rows  : g1, be1, g2, be2, b3
SLAB_ROWS = ROW_PV + 8          # 136
SLAB_COLS = 2 * DIM + WIDTH     # 160


# ---------------------------------------------------------------------------
# Bilinear-resize matrix (torchvision Resize).  For upsampling
# (length >= length_prior) antialias has no effect and the weights equal
# align_corners=False bilinear interpolation.
# TODO(synk): if length < length_prior (downsampling) the antialiased kernel
# has wider support; not implemented here.
# ---------------------------------------------------------------------------
def bilinear_resize_matrix(in_size: int, out_size: int) -> np.ndarray:
    R = np.zeros((out_size, in_size), dtype=np.float64)
    scale = in_size / out_size
    for i in range(out_size):
        src = (i + 0.5) * scale - 0.5
        x0 = int(np.floor(src))
        w = src - x0
        i0 = min(max(x0, 0), in_size - 1)
        i1 = min(max(x0 + 1, 0), in_size - 1)
        R[i, i0] += 1.0 - w
        R[i, i1] += w
    return R


def make_resize_kt() -> np.ndarray:
    """(dim_prior, dim) matrix K^T such that resize(img).flatten() = img.flatten() @ K^T."""
    R = bilinear_resize_matrix(LENGTH_PRIOR, LENGTH)   # (L, lp)
    K = np.kron(R, R)                                  # (dim, dim_prior)
    return K.T.astype(np.float32)                      # (dim_prior, dim)


# ---------------------------------------------------------------------------
# Host-side parameter packing: ONE slab for the whole network.
# ---------------------------------------------------------------------------
def pack_params(raw):
    """Returns a single (SLAB_ROWS, SLAB_COLS) f32 parameter slab."""
    kt = make_resize_kt()                                   # (dp, dim)
    kt_blk = np.zeros((2 * DIM_PRIOR, 2 * DIM), np.float32)
    kt_blk[:DIM_PRIOR, :DIM] = kt
    kt_blk[DIM_PRIOR:, DIM:] = kt

    slab = np.zeros((SLAB_ROWS, SLAB_COLS), np.float32)

    # Fused front weight: cols 0:128 = skip_const * blockdiag(resize, resize)
    # applied to x_perm rows; cols 128:160 = W1 applied to x rows.
    slab[ROW_WF:ROW_WF + 2 * DIM_PRIOR, :2 * DIM] = SKIP_CONST * kt_blk
    slab[ROW_WF + 2 * DIM_PRIOR:ROW_WF + 4 * DIM_PRIOR, 2 * DIM:] = np.asarray(raw["w1"])
    # b1/b2 intentionally dropped: cancelled by training-mode BatchNorm.

    slab[ROW_W2:ROW_W2 + WIDTH, :WIDTH]   = np.asarray(raw["w2"])
    slab[ROW_W3:ROW_W3 + WIDTH, :2 * DIM] = np.asarray(raw["w3"])

    slab[ROW_PV + 0, :WIDTH]   = np.asarray(raw["g1"])
    slab[ROW_PV + 1, :WIDTH]   = np.asarray(raw["be1"])
    slab[ROW_PV + 2, :WIDTH]   = np.asarray(raw["g2"])
    slab[ROW_PV + 3, :WIDTH]   = np.asarray(raw["be2"])
    slab[ROW_PV + 4, :2 * DIM] = np.asarray(raw["b3"])

    return jnp.asarray(slab)


# ---------------------------------------------------------------------------
# Pallas kernel (factory: batch sizes are compile-time constants).
# ---------------------------------------------------------------------------
def make_gennet_kernel(b_valid: int, b_pad: int):
    need_mask = (b_valid != b_pad)
    inv_n = 1.0 / float(b_valid)

    def kernel(xin_ref, p_ref, out_ref):
        f32 = jnp.float32

        # ---- fused front matmul: [skip_const*resize(x_perm) | x @ W1] ------
        wf = p_ref[ROW_WF:ROW_WF + 4 * DIM_PRIOR, :]                       # (64, 160)
        t = jnp.dot(xin_ref[...], wf, preferred_element_type=f32)          # (B, 160)
        x0 = t[:, :2 * DIM]                     # lane-aligned, skip already scaled
        y  = t[:, 2 * DIM:2 * DIM + WIDTH]      # pre-BN hidden (B, WIDTH)

        # Row mask so padded batch rows never pollute BatchNorm statistics.
        if need_mask:
            row_ids = jax.lax.broadcasted_iota(jnp.int32, (b_pad, 1), 0)
            row_valid = row_ids < b_valid                                   # (B_pad, 1)
            row_mask = row_valid.astype(f32)
        else:
            row_valid = None
            row_mask = None

        def bn_elu(y, gamma, beta):
            # BatchNorm1d, training mode: biased batch statistics over axis 0.
            if row_mask is None:
                mean = jnp.mean(y, axis=0, keepdims=True)
                d = y - mean
                var = jnp.mean(d * d, axis=0, keepdims=True)
            else:
                mean = jnp.sum(y * row_mask, axis=0, keepdims=True) * inv_n
                d = y - mean
                var = jnp.sum(d * d * row_mask, axis=0, keepdims=True) * inv_n
            y = d * (gamma * jax.lax.rsqrt(var + BN_EPS)) + beta
            # ELU (alpha = 1)
            return jnp.where(y > 0, y, jnp.exp(y) - 1.0)

        g1  = p_ref[ROW_PV + 0:ROW_PV + 1, :WIDTH]
        be1 = p_ref[ROW_PV + 1:ROW_PV + 2, :WIDTH]
        g2  = p_ref[ROW_PV + 2:ROW_PV + 3, :WIDTH]
        be2 = p_ref[ROW_PV + 3:ROW_PV + 4, :WIDTH]
        b3  = p_ref[ROW_PV + 4:ROW_PV + 5, :2 * DIM]
        w2  = p_ref[ROW_W2:ROW_W2 + WIDTH, :WIDTH]
        w3  = p_ref[ROW_W3:ROW_W3 + WIDTH, :2 * DIM]

        # ---- MLP trunk ------------------------------------------------------
        y = bn_elu(y, g1, be1)
        y = jnp.dot(y, w2, preferred_element_type=f32)
        y = bn_elu(y, g2, be2)
        z = jnp.dot(y, w3, preferred_element_type=f32) + b3
        z = jax.nn.sigmoid(z)

        # ---- skip connection + ReLU (skip_const already folded into x0) -----
        z = jnp.maximum(z + x0, 0.0)

        # ---- lane-dense double per-half row-normalisation --------------------
        lane = jax.lax.broadcasted_iota(jnp.int32, (1, 2 * DIM), 1)
        is_a = lane < DIM                                        # (1, 128) bool

        def renorm(z, approx):
            sum_a = jnp.sum(jnp.where(is_a, z, 0.0), axis=1, keepdims=True)  # (B,1)
            sum_b = jnp.sum(z, axis=1, keepdims=True) - sum_a                # (B,1)
            inv_a = pl.reciprocal(sum_a, approx=approx)
            inv_b = pl.reciprocal(sum_b, approx=approx)
            return z * jnp.where(is_a, inv_a, inv_b)

        z = renorm(z, True)          # fast approx pass (EUP)
        z = z + DUST_CONST
        z = renorm(z, False)         # exact pass -> per-half sums == 1

        # Keep padded rows finite (zero) so non-finite checks never trip.
        if row_valid is not None:
            z = jnp.where(row_valid, z, 0.0)

        out_ref[...] = z

    return kernel


# ---------------------------------------------------------------------------
# Wrapper: all layout plumbing + the pallas_call fused under one jit.
# ---------------------------------------------------------------------------
@jax.jit
def gennet_forward(x, slab):
    B = x.shape[0]
    b_pad = ((B + 7) // 8) * 8        # pad batch to full f32 sublane groups

    # Batch-permuted half-images, exactly as the PyTorch reshape produces them.
    h_all = x.reshape(2 * B, DIM_PRIOR)                       # (2B, dp)
    x_perm = jnp.concatenate([h_all[:B], h_all[B:]], axis=1)  # (B, 2*dp)
    xin = jnp.concatenate([x_perm, x], axis=1)                # (B, 4*dp) = (B, 64)
    if b_pad != B:
        xin = jnp.pad(xin, ((0, b_pad - B), (0, 0)))

    vmem = pl.BlockSpec(memory_space=pltpu.MemorySpace.VMEM)
    out_pad = pl.pallas_call(
        make_gennet_kernel(B, b_pad),
        out_shape=jax.ShapeDtypeStruct((b_pad, 2 * DIM), jnp.float32),
        in_specs=[vmem, vmem],
        out_specs=vmem,
    )(xin, slab)
    return out_pad[:B]


# ---------------------------------------------------------------------------
# Pure-JAX reference mirroring the PyTorch module exactly (keeps b1/b2,
# the reshape, the split/renorm/concat tail).
# ---------------------------------------------------------------------------
def gennet_reference(x, raw):
    B = x.shape[0]
    kt = jnp.asarray(make_resize_kt())
    halves = x.reshape(2, B, DIM_PRIOR)
    s0 = halves[0] @ kt
    s1 = halves[1] @ kt
    x0 = jnp.concatenate([s0, s1], axis=1)

    def bn_elu(y, g, be):
        m = jnp.mean(y, axis=0, keepdims=True)
        v = jnp.mean((y - m) ** 2, axis=0, keepdims=True)
        y = (y - m) / jnp.sqrt(v + BN_EPS) * g + be
        return jnp.where(y > 0, y, jnp.exp(y) - 1.0)

    y = bn_elu(x @ raw["w1"] + raw["b1"], raw["g1"], raw["be1"])
    y = bn_elu(y @ raw["w2"] + raw["b2"], raw["g2"], raw["be2"])
    z = jax.nn.sigmoid(y @ raw["w3"] + raw["b3"])
    z = jnp.maximum(z + SKIP_CONST * x0, 0.0)
    a, b = z[:, :DIM], z[:, DIM:]
    a = a / a.sum(1, keepdims=True); b = b / b.sum(1, keepdims=True)
    a = a + DUST_CONST;               b = b + DUST_CONST
    a = a / a.sum(1, keepdims=True); b = b / b.sum(1, keepdims=True)
    return jnp.concatenate([a, b], axis=1)


def init_raw_params(key):
    k1, k2, k3 = jax.random.split(key, 3)

    def linear(k, fan_in, fan_out):
        kw, kb = jax.random.split(k)
        w = jax.random.normal(kw, (fan_in, fan_out), jnp.float32) / jnp.sqrt(float(fan_in))
        b = 0.1 * jax.random.normal(kb, (fan_out,), jnp.float32)
        return w, b

    w1, b1 = linear(k1, 2 * DIM_PRIOR, WIDTH)
    w2, b2 = linear(k2, WIDTH, WIDTH)
    w3, b3 = linear(k3, WIDTH, 2 * DIM)
    return dict(
        w1=w1, b1=b1, g1=jnp.ones((WIDTH,), jnp.float32), be1=jnp.zeros((WIDTH,), jnp.float32),
        w2=w2, b2=b2, g2=jnp.ones((WIDTH,), jnp.float32), be2=jnp.zeros((WIDTH,), jnp.float32),
        w3=w3, b3=b3,
    )


if __name__ == "__main__":
    key = jax.random.PRNGKey(0)
    pkey, xkey = jax.random.split(key)
    raw = init_raw_params(pkey)
    slab = pack_params(raw)

    # input: (batch, 2 * dim_prior), positive values like flattened images
    x = jax.random.uniform(xkey, (BATCH, 2 * DIM_PRIOR), jnp.float32)

    out = gennet_forward(x, slab)
    out = jax.block_until_ready(out)

    ref = gennet_reference(x, raw)
    assert out.shape == (BATCH, 2 * DIM)
    assert bool(jnp.all(jnp.isfinite(out)))
    # approx reciprocal only in the first renorm pass; second pass is exact
    np.testing.assert_allclose(np.asarray(out), np.asarray(ref), rtol=2e-3, atol=1e-5)
    np.testing.assert_allclose(np.asarray(out[:, :DIM].sum(1)), np.ones(BATCH), atol=1e-4)
    np.testing.assert_allclose(np.asarray(out[:, DIM:].sum(1)), np.ones(BATCH), atol=1e-4)

    print("KERNEL_OK")
</pallas_src>

<mosaic_0001>
module attributes {stable_mosaic.version = 11 : i64} {
  func.func @kernel(%arg0: memref<8x64xf32, #tpu.memory_space<vmem>>, %arg1: memref<136x160xf32, #tpu.memory_space<vmem>>, %arg2: memref<8x128xf32, #tpu.memory_space<vmem>>) attributes {dimension_semantics = [], scalar_prefetch = 0 : i64, scratch_operands = 0 : i64, tpu.core_type = #tpu.core_type<tc>} {
    %c0 = arith.constant 0 : index
    %c0_0 = arith.constant 0 : index
    %0 = vector.load %arg1[%c0, %c0_0] : memref<136x160xf32, #tpu.memory_space<vmem>>, vector<64x160xf32>
    %c0_1 = arith.constant 0 : index
    %c0_2 = arith.constant 0 : index
    %1 = vector.load %arg0[%c0_1, %c0_2] : memref<8x64xf32, #tpu.memory_space<vmem>>, vector<8x64xf32>
    %cst = arith.constant dense<0.000000e+00> : vector<8x160xf32>
    %2 = tpu.matmul %1, %0, %cst {dimension_numbers = #tpu.dot_dimension_numbers<[1], [0], [0], [1], [0, 0, 1, 1], [], []>} : vector<8x64xf32>, vector<64x160xf32>, vector<8x160xf32> -> vector<8x160xf32>
    %3 = vector.extract_strided_slice %2 {offsets = [0, 0], sizes = [8, 128], strides = [1, 1]} : vector<8x160xf32> to vector<8x128xf32>
    %4 = vector.extract_strided_slice %2 {offsets = [0, 128], sizes = [8, 32], strides = [1, 1]} : vector<8x160xf32> to vector<8x32xf32>
    %5 = tpu.iota {dimensions = array<i32: 0>} : vector<8x1xi32>
    %c4_i32 = arith.constant 4 : i32
    %6 = vector.broadcast %c4_i32 : i32 to vector<8x1xi32>
    %7 = arith.cmpi slt, %5, %6 : vector<8x1xi32>
    %8 = arith.extui %7 : vector<8x1xi1> to vector<8x1xi32>
    %9 = arith.sitofp %8 : vector<8x1xi32> to vector<8x1xf32>
    %c128 = arith.constant 128 : index
    %c0_3 = arith.constant 0 : index
    %10 = vector.load %arg1[%c128, %c0_3] : memref<136x160xf32, #tpu.memory_space<vmem>>, vector<1x32xf32>
    %c129 = arith.constant 129 : index
    %c0_4 = arith.constant 0 : index
    %11 = vector.load %arg1[%c129, %c0_4] : memref<136x160xf32, #tpu.memory_space<vmem>>, vector<1x32xf32>
    %c130 = arith.constant 130 : index
    %c0_5 = arith.constant 0 : index
    %12 = vector.load %arg1[%c130, %c0_5] : memref<136x160xf32, #tpu.memory_space<vmem>>, vector<1x32xf32>
    %c131 = arith.constant 131 : index
    %c0_6 = arith.constant 0 : index
    %13 = vector.load %arg1[%c131, %c0_6] : memref<136x160xf32, #tpu.memory_space<vmem>>, vector<1x32xf32>
    %c132 = arith.constant 132 : index
    %c0_7 = arith.constant 0 : index
    %14 = vector.load %arg1[%c132, %c0_7] : memref<136x160xf32, #tpu.memory_space<vmem>>, vector<1x128xf32>
    %c64 = arith.constant 64 : index
    %c0_8 = arith.constant 0 : index
    %15 = vector.load %arg1[%c64, %c0_8] : memref<136x160xf32, #tpu.memory_space<vmem>>, vector<32x32xf32>
    %c96 = arith.constant 96 : index
    %c0_9 = arith.constant 0 : index
    %16 = vector.load %arg1[%c96, %c0_9] : memref<136x160xf32, #tpu.memory_space<vmem>>, vector<32x128xf32>
    %17 = vector.broadcast %9 : vector<8x1xf32> to vector<8x32xf32>
    %18 = arith.mulf %4, %17 : vector<8x32xf32>
    %cst_10 = arith.constant dense<0.000000e+00> : vector<32xf32>
    %19 = vector.multi_reduction <add>, %18, %cst_10 [0] : vector<8x32xf32> to vector<32xf32>
    %20 = vector.shape_cast %19 : vector<32xf32> to vector<1x32xf32>
    %cst_11 = arith.constant 2.500000e-01 : f32
    %21 = vector.broadcast %cst_11 : f32 to vector<1x32xf32>
    %22 = arith.mulf %20, %21 : vector<1x32xf32>
    %23 = vector.broadcast %22 : vector<1x32xf32> to vector<8x32xf32>
    %24 = arith.subf %4, %23 : vector<8x32xf32>
    %25 = arith.mulf %24, %24 : vector<8x32xf32>
    %26 = vector.broadcast %9 : vector<8x1xf32> to vector<8x32xf32>
    %27 = arith.mulf %25, %26 : vector<8x32xf32>
    %cst_12 = arith.constant dense<0.000000e+00> : vector<32xf32>
    %28 = vector.multi_reduction <add>, %27, %cst_12 [0] : vector<8x32xf32> to vector<32xf32>
    %29 = vector.shape_cast %28 : vector<32xf32> to vector<1x32xf32>
    %cst_13 = arith.constant 2.500000e-01 : f32
    %30 = vector.broadcast %cst_13 : f32 to vector<1x32xf32>
    %31 = arith.mulf %29, %30 : vector<1x32xf32>
    %cst_14 = arith.constant 9.99999974E-6 : f32
    %32 = vector.broadcast %cst_14 : f32 to vector<1x32xf32>
    %33 = arith.addf %31, %32 : vector<1x32xf32>
    %34 = math.rsqrt %33 : vector<1x32xf32>
    %35 = arith.mulf %10, %34 : vector<1x32xf32>
    %36 = vector.broadcast %35 : vector<1x32xf32> to vector<8x32xf32>
    %37 = arith.mulf %24, %36 : vector<8x32xf32>
    %38 = vector.broadcast %11 : vector<1x32xf32> to vector<8x32xf32>
    %39 = arith.addf %37, %38 : vector<8x32xf32>
    %cst_15 = arith.constant 0.000000e+00 : f32
    %40 = vector.broadcast %cst_15 : f32 to vector<8x32xf32>
    %41 = arith.cmpf ogt, %39, %40 : vector<8x32xf32>
    %42 = math.exp %39 : vector<8x32xf32>
    %cst_16 = arith.constant 1.000000e+00 : f32
    %43 = vector.broadcast %cst_16 : f32 to vector<8x32xf32>
    %44 = arith.subf %42, %43 : vector<8x32xf32>
    %45 = arith.select %41, %39, %44 : vector<8x32xi1>, vector<8x32xf32>
    %cst_17 = arith.constant dense<0.000000e+00> : vector<8x32xf32>
    %46 = tpu.matmul %45, %15, %cst_17 {dimension_numbers = #tpu.dot_dimension_numbers<[1], [0], [0], [1], [0, 0, 1, 1], [], []>} : vector<8x32xf32>, vector<32x32xf32>, vector<8x32xf32> -> vector<8x32xf32>
    %47 = vector.broadcast %9 : vector<8x1xf32> to vector<8x32xf32>
    %48 = arith.mulf %46, %47 : vector<8x32xf32>
    %cst_18 = arith.constant dense<0.000000e+00> : vector<32xf32>
    %49 = vector.multi_reduction <add>, %48, %cst_18 [0] : vector<8x32xf32> to vector<32xf32>
    %50 = vector.shape_cast %49 : vector<32xf32> to vector<1x32xf32>
    %cst_19 = arith.constant 2.500000e-01 : f32
    %51 = vector.broadcast %cst_19 : f32 to vector<1x32xf32>
    %52 = arith.mulf %50, %51 : vector<1x32xf32>
    %53 = vector.broadcast %52 : vector<1x32xf32> to vector<8x32xf32>
    %54 = arith.subf %46, %53 : vector<8x32xf32>
    %55 = arith.mulf %54, %54 : vector<8x32xf32>
    %56 = vector.broadcast %9 : vector<8x1xf32> to vector<8x32xf32>
    %57 = arith.mulf %55, %56 : vector<8x32xf32>
    %cst_20 = arith.constant dense<0.000000e+00> : vector<32xf32>
    %58 = vector.multi_reduction <add>, %57, %cst_20 [0] : vector<8x32xf32> to vector<32xf32>
    %59 = vector.shape_cast %58 : vector<32xf32> to vector<1x32xf32>
    %cst_21 = arith.constant 2.500000e-01 : f32
    %60 = vector.broadcast %cst_21 : f32 to vector<1x32xf32>
    %61 = arith.mulf %59, %60 : vector<1x32xf32>
    %cst_22 = arith.constant 9.99999974E-6 : f32
    %62 = vector.broadcast %cst_22 : f32 to vector<1x32xf32>
    %63 = arith.addf %61, %62 : vector<1x32xf32>
    %64 = math.rsqrt %63 : vector<1x32xf32>
    %65 = arith.mulf %12, %64 : vector<1x32xf32>
    %66 = vector.broadcast %65 : vector<1x32xf32> to vector<8x32xf32>
    %67 = arith.mulf %54, %66 : vector<8x32xf32>
    %68 = vector.broadcast %13 : vector<1x32xf32> to vector<8x32xf32>
    %69 = arith.addf %67, %68 : vector<8x32xf32>
    %cst_23 = arith.constant 0.000000e+00 : f32
    %70 = vector.broadcast %cst_23 : f32 to vector<8x32xf32>
    %71 = arith.cmpf ogt, %69, %70 : vector<8x32xf32>
    %72 = math.exp %69 : vector<8x32xf32>
    %cst_24 = arith.constant 1.000000e+00 : f32
    %73 = vector.broadcast %cst_24 : f32 to vector<8x32xf32>
    %74 = arith.subf %72, %73 : vector<8x32xf32>
    %75 = arith.select %71, %69, %74 : vector<8x32xi1>, vector<8x32xf32>
    %cst_25 = arith.constant dense<0.000000e+00> : vector<8x128xf32>
    %76 = tpu.matmul %75, %16, %cst_25 {dimension_numbers = #tpu.dot_dimension_numbers<[1], [0], [0], [1], [0, 0, 1, 1], [], []>} : vector<8x32xf32>, vector<32x128xf32>, vector<8x128xf32> -> vector<8x128xf32>
    %77 = vector.broadcast %14 : vector<1x128xf32> to vector<8x128xf32>
    %78 = arith.addf %76, %77 : vector<8x128xf32>
    %79 = arith.negf %78 : vector<8x128xf32>
    %80 = math.exp %79 : vector<8x128xf32>
    %cst_26 = arith.constant 1.000000e+00 : f32
    %81 = vector.broadcast %cst_26 : f32 to vector<8x128xf32>
    %82 = arith.addf %81, %80 : vector<8x128xf32>
    %83 = arith.divf %81, %82 : vector<8x128xf32>
    %84 = arith.addf %83, %3 : vector<8x128xf32>
    %cst_27 = arith.constant 0.000000e+00 : f32
    %85 = vector.broadcast %cst_27 : f32 to vector<8x128xf32>
    %86 = arith.maximumf %84, %85 : vector<8x128xf32>
    %87 = tpu.iota {dimensions = array<i32: 1>} : vector<1x128xi32>
    %c64_i32 = arith.constant 64 : i32
    %88 = vector.broadcast %c64_i32 : i32 to vector<1x128xi32>
    %89 = arith.cmpi slt, %87, %88 : vector<1x128xi32>
    %cst_28 = arith.constant 0.000000e+00 : f32
    %90 = vector.shape_cast %89 : vector<1x128xi1> to vector<1x128xi1>
    %91 = vector.broadcast %90 : vector<1x128xi1> to vector<8x128xi1>
    %92 = vector.broadcast %cst_28 : f32 to vector<8x128xf32>
    %93 = arith.select %91, %86, %92 : vector<8x128xi1>, vector<8x128xf32>
    %cst_29 = arith.constant dense<0.000000e+00> : vector<8xf32>
    %94 = vector.multi_reduction <add>, %93, %cst_29 [1] : vector<8x128xf32> to vector<8xf32>
    %95 = vector.shape_cast %94 : vector<8xf32> to vector<8x1xf32>
    %cst_30 = arith.constant dense<0.000000e+00> : vector<8xf32>
    %96 = vector.multi_reduction <add>, %86, %cst_30 [1] : vector<8x128xf32> to vector<8xf32>
    %97 = vector.shape_cast %96 : vector<8xf32> to vector<8x1xf32>
    %98 = arith.subf %97, %95 : vector<8x1xf32>
    %99 = tpu.reciprocal %95 {approx = true} : vector<8x1xf32> -> vector<8x1xf32>
    %100 = tpu.reciprocal %98 {approx = true} : vector<8x1xf32> -> vector<8x1xf32>
    %101 = vector.shape_cast %89 : vector<1x128xi1> to vector<1x128xi1>
    %102 = vector.broadcast %101 : vector<1x128xi1> to vector<8x128xi1>
    %103 = vector.shape_cast %99 : vector<8x1xf32> to vector<8x1xf32>
    %104 = vector.broadcast %103 : vector<8x1xf32> to vector<8x128xf32>
    %105 = vector.shape_cast %100 : vector<8x1xf32> to vector<8x1xf32>
    %106 = vector.broadcast %105 : vector<8x1xf32> to vector<8x128xf32>
    %107 = arith.select %102, %104, %106 : vector<8x128xi1>, vector<8x128xf32>
    %108 = arith.mulf %86, %107 : vector<8x128xf32>
    %cst_31 = arith.constant 9.99999997E-7 : f32
    %109 = vector.broadcast %cst_31 : f32 to vector<8x128xf32>
    %110 = arith.addf %108, %109 : vector<8x128xf32>
    %cst_32 = arith.constant 0.000000e+00 : f32
    %111 = vector.shape_cast %89 : vector<1x128xi1> to vector<1x128xi1>
    %112 = vector.broadcast %111 : vector<1x128xi1> to vector<8x128xi1>
    %113 = vector.broadcast %cst_32 : f32 to vector<8x128xf32>
    %114 = arith.select %112, %110, %113 : vector<8x128xi1>, vector<8x128xf32>
    %cst_33 = arith.constant dense<0.000000e+00> : vector<8xf32>
    %115 = vector.multi_reduction <add>, %114, %cst_33 [1] : vector<8x128xf32> to vector<8xf32>
    %116 = vector.shape_cast %115 : vector<8xf32> to vector<8x1xf32>
    %cst_34 = arith.constant dense<0.000000e+00> : vector<8xf32>
    %117 = vector.multi_reduction <add>, %110, %cst_34 [1] : vector<8x128xf32> to vector<8xf32>
    %118 = vector.shape_cast %117 : vector<8xf32> to vector<8x1xf32>
    %119 = arith.subf %118, %116 : vector<8x1xf32>
    %120 = tpu.reciprocal %116 : vector<8x1xf32> -> vector<8x1xf32>
    %121 = tpu.reciprocal %119 : vector<8x1xf32> -> vector<8x1xf32>
    %122 = vector.shape_cast %89 : vector<1x128xi1> to vector<1x128xi1>
    %123 = vector.broadcast %122 : vector<1x128xi1> to vector<8x128xi1>
    %124 = vector.shape_cast %120 : vector<8x1xf32> to vector<8x1xf32>
    %125 = vector.broadcast %124 : vector<8x1xf32> to vector<8x128xf32>
    %126 = vector.shape_cast %121 : vector<8x1xf32> to vector<8x1xf32>
    %127 = vector.broadcast %126 : vector<8x1xf32> to vector<8x128xf32>
    %128 = arith.select %123, %125, %127 : vector<8x128xi1>, vector<8x128xf32>
    %129 = arith.mulf %110, %128 : vector<8x128xf32>
    %cst_35 = arith.constant 0.000000e+00 : f32
    %130 = vector.shape_cast %7 : vector<8x1xi1> to vector<8x1xi1>
    %131 = vector.broadcast %130 : vector<8x1xi1> to vector<8x128xi1>
    %132 = vector.broadcast %cst_35 : f32 to vector<8x128xf32>
    %133 = arith.select %131, %129, %132 : vector<8x128xi1>, vector<8x128xf32>
    %c0_36 = arith.constant 0 : index
    %c0_37 = arith.constant 0 : index
    %134 = vector.load %arg2[%c0_36, %c0_37] : memref<8x128xf32, #tpu.memory_space<vmem>>, vector<8x128xf32>
    tpu.vector_store %arg2[%c0_36, %c0_37], %133 {strides = array<i32>} : memref<8x128xf32, #tpu.memory_space<vmem>>, vector<8x128xf32>,
    return
  }
}

</mosaic_0001>

<bundles_post_ra>
// kernel: gennet_forward.1
= control target key start
LH: loop header
LB: loop body
LE: loop exit
PB: predicated region body
PF: predicated region fallthrough
CT: control target
= control target key end

     0   :  { %7 = vsyncpa [#allocation3], 0  ;;  %s370_s12 = smov [#allocation2]   ;;  %s371_s14 = smov 256   ;;  %s429_s0 = inlined_call_operand.vmem [shape: f32[8,64], index: 0, kind: input, shape index: {}]   ;;  %s430_s1 = inlined_call_operand.hbm [shape: f32[136,160], index: 1, kind: input, shape index: {}]   ;;  %s431_s2 = inlined_call_operand.vmem [shape: f32[8,128], index: 2, kind: output, shape index: {}]  }
   0x1   :  { %s14_s11 = sshll.u32 %s430_s1, 4  ;;  %s16_s13 = sshll.u32 %s370_s12, 4  ;;  %s15_s11 = int_to_ptr.hbm [resolvable:$true] %s14_s11  ;;  %s17_s13 = int_to_ptr.vmem [resolvable:$true] %s16_s13 }
   0x2   :  { %s372_s15 = smov 16  }
   0x3   :  { %22 = dma.hbm_to_vmem [thread:$0]  %s15_s11, 4352, %s17_s13, [#allocation3], %s371_s14, %s371_s14, %s372_s15  }
   0x4   :  { %368 = dma.done.wait [#allocation3], 4352  }
   0x5   :  { %369 = vsyncadd [#allocation3], 4294962944  ;;  %v42_v0 = vld [vmem:[#allocation2 + $0x78] sm:$0xff]  ;;  %v40_v1 = vld [vmem:[#allocation2 + $0x68] sm:$0xff]  ;;  %vm44_vm0 = vcmask 523264   ;;  %v88_v9 = vlaneseq  ;;  %v373_v11 = vmov 0.0  }
   0x6   :  { %76 = vmatpush.msra.mxu1 %v42_v0  ;;  %v38_v2 = vld [vmem:[#allocation2 + $0x58] sm:$0xff]  ;;  %v36_v3 = vld [vmem:[#allocation2 + $0x48] sm:$0xff]  ;;  %v395_v8 = vld [vmem:[%s429_s0] sm:$0xff]  ;;  %vm107_vm2 = vcmask 261120  }
   0x7   :  { %v34_v4 = vld [vmem:[#allocation2 + $0x38] sm:$0xff]  ;;  %v32_v5 = vld [vmem:[#allocation2 + $0x28] sm:$0xff]  ;;  %v400_v10 = vshrl.u32 %v88_v9, 7  ;;  %v101_v31 = vld [vmem:[#allocation2 + $0xb0] sm:$0xff] }
   0x8   :  { %77 = vmatpush.msra.mxu1 %v40_v1  ;;  %v30_v6 = vld [vmem:[#allocation2 + $0x18] sm:$0xff]  ;;  %v28_v7 = vld [vmem:[#allocation2 + $0x8] sm:$0xff]  ;;  %v100_v32 = vld [vmem:[#allocation2 + $0xa0] sm:$0xff]  ;;  %161 = vmatpush.msra.mxu2 %v101_v31 }
   0x9   :  { %vm90_vm1 = vcmp.lt.s32.totalorder %v400_v10, 4  ;;  %v99_v34 = vld [vmem:[#allocation2 + $0x90] sm:$0xff]  ;;  %v98_v36 = vld [vmem:[#allocation2 + $0x80] sm:$0xff] }
   0xa   :  { %78 = vmatpush.msra.mxu1 %v38_v2  ;;  %v405_v12 = vsel %vm90_vm1, 1.0, %v373_v11  ;;  %162 = vmatpush.msra.mxu2 %v100_v32  ;;  %v93_v44 = vld [vmem:[#allocation2 + $0x100] ss:$0 sm:$0xff]  ;;  %v94_v48 = vld [vmem:[#allocation2 + $0x101] ss:$0 sm:$0xff]  ;;  %v29_v31 = vld [vmem:[#allocation2 + $0x10] sm:$0xff] }
   0xb   :  { %v95_v32 = vld [vmem:[#allocation2 + $0x102] ss:$0 sm:$0xff] }
   0xc   :  { %79 = vmatpush.msra.mxu1 %v36_v3  ;;  %163 = vmatpush.msra.mxu2 %v99_v34  ;;  %v27_v34 = vld [vmem:[#allocation2] sm:$0xff] }
   0xe   :  { %80 = vmatpush.msra.mxu1 %v34_v4  ;;  %164 = vmatpush.msra.mxu2 %v98_v36 }
  0x10   :  { %81 = vmatpush.msra.mxu1 %v32_v5 }
  0x12   :  { %82 = vmatpush.msra.mxu1 %v30_v6 }
  0x14   :  { %83 = vmatpush.msra.mxu1 %v28_v7 }
  0x15   :  { %313 = vmatmul.msk.f32.vlgmr.msra.gmra.mxu1 %vm44_vm0, %v395_v8 }
  0x92   :  { %v85_v13 = vpop.f32.mrf.mxu1 }
  0x93   :  { %v106_v14 = vmul.f32 %v405_v12, %v85_v13 }
  0x95   :  { %v108_v15 = vsel %vm107_vm2, %v106_v14, 0.0  ;;  %v104_v14 = vld [vmem:[#allocation2 + $0xe0] sm:$0xff] }
  0x96   :  { %v109_v16 = vrot.slane %v108_v15, 4 }
  0x98   :  { %v110_v17 = vadd.f32 %v109_v16, %v108_v15  ;;  %v103_v16 = vld [vmem:[#allocation2 + $0xd0] sm:$0xff] }
  0x9a   :  { %v111_v18 = vrot.slane %v110_v17, 2 }
  0x9c   :  { %v112_v19 = vadd.f32 %v111_v18, %v110_v17  ;;  %v102_v18 = vld [vmem:[#allocation2 + $0xc0] sm:$0xff] }
  0x9e   :  { %v113_v20 = vrot.slane %v112_v19, 1 }
  0xa0   :  { %v114_v21 = vadd.f32 %v113_v20, %v112_v19 }
  0xa2   :  { %v115_v22 = vmul.f32 0.25, %v114_v21  ;;  %v39_v21 = vld [vmem:[#allocation2 + $0x60] sm:$0xff] }
  0xa4   :  { %v116_v23 = vsub.f32 %v85_v13, %v115_v22  ;;  %v105_v13 = vld [vmem:[#allocation2 + $0xf0] sm:$0xff] }
  0xa5   :  { %223 = vmatpush.msra.mxu3 %v105_v13 }
  0xa6   :  { %v117_v24 = vmul.f32 %v116_v23, %v116_v23 }
  0xa7   :  { %224 = vmatpush.msra.mxu3 %v104_v14 }
  0xa8   :  { %v118_v25 = vmul.f32 %v405_v12, %v117_v24 }
  0xa9   :  { %225 = vmatpush.msra.mxu3 %v103_v16 }
  0xaa   :  { %v119_v26 = vsel %vm107_vm2, %v118_v25, 0.0  ;;  %v35_v25 = vld [vmem:[#allocation2 + $0x40] sm:$0xff] }
  0xab   :  { %v120_v27 = vrot.slane %v119_v26, 4  ;;  %226 = vmatpush.msra.mxu3 %v102_v18 }
  0xad   :  { %v121_v28 = vadd.f32 %v120_v27, %v119_v26  ;;  %v33_v27 = vld [vmem:[#allocation2 + $0x30] sm:$0xff] }
  0xaf   :  { %v122_v29 = vrot.slane %v121_v28, 2 }
  0xb1   :  { %v123_v30 = vadd.f32 %v122_v29, %v121_v28  ;;  %v31_v29 = vld [vmem:[#allocation2 + $0x20] sm:$0xff] }
  0xb3   :  { %v124_v33 = vrot.slane %v123_v30, 1 }
  0xb5   :  { %v125_v35 = vadd.f32 %v124_v33, %v123_v30 }
  0xb7   :  { %v126_v37 = vmul.f32 0.25, %v125_v35 }
  0xb9   :  { %v127_v38 = vadd.f32 1e-05, %v126_v37  ;;  %v96_v37 = vld [vmem:[#allocation2 + $0x103] ss:$0 sm:$0xff] }
  0xbb   :  { %324 = vrsqrt.f32 %v127_v38  ;;  %vm134_vm4 = vweird.f32 %v127_v38 }
  0xc1   :  { %v325_v39 = vpop.eup %324 }
  0xc2   :  { %v129_v40 = vmul.f32 %v325_v39, %v127_v38  ;;  %vm135_vm3 = vweird.f32 %v325_v39 }
  0xc3   :  { %vm136_vm5 = vmor %vm134_vm4, %vm135_vm3 }
  0xc4   :  { %v130_v41 = vmul.f32 %v325_v39, %v129_v40 }
  0xc6   :  { %v131_v42 = vmul.f32 0.5, %v130_v41 }
  0xc8   :  { %v132_v43 = vsub.f32 1.5, %v131_v42 }
  0xca   :  { %v133_v45 = vmul.f32 %v325_v39, %v132_v43 }
  0xcc   :  { %v137_v46 = vsel %vm136_vm5, %v325_v39, %v133_v45 }
  0xcd   :  { %v138_v47 = vmul.f32 %v137_v46, %v93_v44  ;;  %v97_v44 = vld [vmem:[#allocation2 + $0x104] ss:$0 sm:$0xff] }
  0xcf   :  { %v139_v49 = vmul.f32 %v138_v47, %v116_v23  ;;  %v37_v23 = vld [vmem:[#allocation2 + $0x50] sm:$0xff] }
  0xd1   :  { %v140_v50 = vadd.f32 %v139_v49, %v94_v48 }
  0xd3   :  { %v142_v51 = vmul.f32 1.442695, %v140_v50  ;;  %vm141_vm6 = vcmp.gt.f32.partialorder %v140_v50, 0.0 }
  0xd5   :  { %326 = vpow2.f32 %v142_v51 }
  0xdb   :  { %v327_v52 = vpop.eup %326 }
  0xdc   :  { %v315_v53 = vadd.f32 -1.0, %v327_v52 }
  0xde   :  { %v145_v54 = vsel %vm141_vm6, %v140_v50, %v315_v53 }
  0xdf   :  { %316 = vmatmul.msk.f32.vlgmr.msra.gmra.mxu2 %vm107_vm2, %v145_v54 }
 0x162   :  { %v166_v55 = vpop.f32.mrf.mxu2 }
 0x163   :  { %v169_v56 = vmul.f32 %v405_v12, %v166_v55 }
 0x165   :  { %v170_v57 = vsel %vm107_vm2, %v169_v56, 0.0 }
 0x166   :  { %v171_v58 = vrot.slane %v170_v57, 4 }
 0x168   :  { %v172_v59 = vadd.f32 %v171_v58, %v170_v57  ;;  %v253_v58 = vand.u32 127, %v88_v9 }
 0x16a   :  { %v173_v60 = vrot.slane %v172_v59, 2  ;;  %vm254_vm15 = vcmp.lt.s32.totalorder %v253_v58, 64 }
 0x16c   :  { %v174_v61 = vadd.f32 %v173_v60, %v172_v59 }
 0x16e   :  { %v175_v62 = vrot.slane %v174_v61, 1 }
 0x170   :  { %v176_v63 = vadd.f32 %v175_v62, %v174_v61 }
 0x172   :  { %v177_v0 = vmul.f32 0.25, %v176_v63 }
 0x174   :  { %v178_v1 = vsub.f32 %v166_v55, %v177_v0 }
 0x176   :  { %v179_v2 = vmul.f32 %v178_v1, %v178_v1 }
 0x178   :  { %v180_v3 = vmul.f32 %v405_v12, %v179_v2  ;;  %v41_v12 = vld [vmem:[#allocation2 + $0x70] sm:$0xff] }
 0x179   :  { %56 = vmatpush.msra.mxu0 %v41_v12 }
 0x17a   :  { %v181_v4 = vsel %vm107_vm2, %v180_v3, 0.0 }
 0x17b   :  { %v182_v5 = vrot.slane %v181_v4, 4  ;;  %57 = vmatpush.msra.mxu0 %v39_v21 }
 0x17d   :  { %v183_v6 = vadd.f32 %v182_v5, %v181_v4  ;;  %58 = vmatpush.msra.mxu0 %v37_v23 }
 0x17f   :  { %v184_v7 = vrot.slane %v183_v6, 2  ;;  %59 = vmatpush.msra.mxu0 %v35_v25 }
 0x181   :  { %v185_v11 = vadd.f32 %v184_v7, %v183_v6  ;;  %60 = vmatpush.msra.mxu0 %v33_v27 }
 0x183   :  { %v186_v15 = vrot.slane %v185_v11, 1  ;;  %61 = vmatpush.msra.mxu0 %v31_v29 }
 0x185   :  { %v187_v17 = vadd.f32 %v186_v15, %v185_v11  ;;  %62 = vmatpush.msra.mxu0 %v29_v31 }
 0x187   :  { %v188_v19 = vmul.f32 0.25, %v187_v17  ;;  %63 = vmatpush.msra.mxu0 %v27_v34 }
 0x188   :  { %312 = vmatmul.msk.f32.vlgmr.msra.gmra.mxu0 %vm44_vm0, %v395_v8 }
 0x189   :  { %v189_v20 = vadd.f32 1e-05, %v188_v19 }
 0x18b   :  { %328 = vrsqrt.f32 %v189_v20  ;;  %vm196_vm8 = vweird.f32 %v189_v20 }
 0x191   :  { %v329_v22 = vpop.eup %328 }
 0x192   :  { %v191_v24 = vmul.f32 %v329_v22, %v189_v20  ;;  %vm197_vm7 = vweird.f32 %v329_v22 }
 0x193   :  { %vm198_vm9 = vmor %vm196_vm8, %vm197_vm7 }
 0x194   :  { %v192_v26 = vmul.f32 %v329_v22, %v191_v24 }
 0x196   :  { %v193_v28 = vmul.f32 0.5, %v192_v26 }
 0x198   :  { %v194_v30 = vsub.f32 1.5, %v193_v28 }
 0x19a   :  { %v195_v33 = vmul.f32 %v329_v22, %v194_v30 }
 0x19c   :  { %v199_v35 = vsel %vm198_vm9, %v329_v22, %v195_v33 }
 0x19d   :  { %v200_v36 = vmul.f32 %v199_v35, %v95_v32 }
 0x19f   :  { %v201_v38 = vmul.f32 %v200_v36, %v178_v1 }
 0x1a1   :  { %v202_v39 = vadd.f32 %v201_v38, %v96_v37 }
 0x1a3   :  { %v204_v40 = vmul.f32 1.442695, %v202_v39  ;;  %vm203_vm10 = vcmp.gt.f32.partialorder %v202_v39, 0.0 }
 0x1a5   :  { %330 = vpow2.f32 %v204_v40 }
 0x1ab   :  { %v331_v41 = vpop.eup %330 }
 0x1ac   :  { %v317_v42 = vadd.f32 -1.0, %v331_v41 }
 0x1ae   :  { %v207_v43 = vsel %vm203_vm10, %v202_v39, %v317_v42 }
 0x1af   :  { %318 = vmatmul.msk.f32.vlgmr.msra.gmra.mxu3 %vm107_vm2, %v207_v43 }
 0x205   :  { %v65_v56 = vpop.f32.mrf.mxu0 }
 0x232   :  { %v228_v45 = vpop.f32.mrf.mxu3 }
 0x233   :  { %v229_v46 = vadd.f32 %v228_v45, %v97_v44 }
 0x235   :  { %v319_v47 = vmul.f32 -1.442695, %v229_v46 }
 0x237   :  { %332 = vpow2.f32 %v319_v47 }
 0x23d   :  { %v333_v48 = vpop.eup %332 }
 0x23e   :  { %v234_v49 = vadd.f32 1.0, %v333_v48 }
 0x240   :  { %334 = vrcp.f32 %v234_v49  ;;  %v246_v52 = vand.u32 2147483648, %v234_v49  ;;  %v244_v54 = vand.u32 2147483647, %v234_v49  ;;  %vm240_vm12 = vweird.f32 %v234_v49 }
 0x242   :  { %v247_v57 = vor.u32 1.1754944e-38, %v246_v52  ;;  %vm245_vm14 = vcmp.eq.f32.partialorder %v244_v54, 8.507059e+37 }
 0x246   :  { %v335_v50 = vpop.eup %334 }
 0x247   :  { %v236_v51 = vmul.f32 %v335_v50, %v234_v49  ;;  %vm241_vm11 = vweird.f32 %v335_v50 }
 0x248   :  { %vm242_vm13 = vmor %vm240_vm12, %vm241_vm11 }
 0x249   :  { %v237_v8 = vsub.f32 1.0, %v236_v51 }
 0x24b   :  { %v238_v53 = vmul.f32 %v335_v50, %v237_v8 }
 0x24d   :  { %v239_v55 = vadd.f32 %v335_v50, %v238_v53 }
 0x24f   :  { %v243_v59 = vsel %vm242_vm13, %v335_v50, %v239_v55 }
 0x250   :  { %v248_v60 = vsel %vm245_vm14, %v247_v57, %v243_v59 }
 0x251   :  { %v250_v61 = vadd.f32 %v248_v60, %v65_v56 }
 0x253   :  { %v251_v62 = vmax.f32 %v250_v61, 0.0 }
 0x255   :  { %v257_v63 = vsel %vm254_vm15, %v251_v62, 0.0 }
 0x256   :  { %258 = vadd.xlane.f32.xlu0 %v257_v63 }
 0x25e   :  { %260 = vadd.xlane.f32.xlu0 %v251_v62 }
 0x2c9   :  { %v259_v0 = vpop.xlane.xlu0 %258 }
 0x2ca   :  { %336 = vrcp.f32 %v259_v0 }
 0x2d0   :  { %v337_v3 = vpop.eup %336 }
 0x2d1   :  { %v261_v1 = vpop.xlane.xlu0 %260 }
 0x2d2   :  { %v262_v2 = vsub.f32 %v261_v1, %v259_v0 }
 0x2d4   :  { %338 = vrcp.f32 %v262_v2 }
 0x2da   :  { %v339_v4 = vpop.eup %338 }
 0x2db   :  { %v265_v5 = vsel %vm254_vm15, %v337_v3, %v339_v4 }
 0x2dc   :  { %v266_v9 = vmul.f32 %v265_v5, %v251_v62 }
 0x2de   :  { %v267_v6 = vadd.f32 1e-06, %v266_v9 }
 0x2e0   :  { %v268_v7 = vsel %vm254_vm15, %v267_v6, 0.0 }
 0x2e1   :  { %269 = vadd.xlane.f32.xlu1 %v268_v7 }
 0x2e9   :  { %271 = vadd.xlane.f32.xlu1 %v267_v6 }
 0x354   :  { %v270_v11 = vpop.xlane.xlu1 %269 }
 0x355   :  { %340 = vrcp.f32 %v270_v11  ;;  %vm279_vm2 = vweird.f32 %v270_v11  ;;  %v285_v22 = vand.u32 2147483648, %v270_v11  ;;  %v283_v24 = vand.u32 2147483647, %v270_v11 }
 0x357   :  { %v286_v29 = vor.u32 1.1754944e-38, %v285_v22  ;;  %vm284_vm7 = vcmp.eq.f32.partialorder %v283_v24, 8.507059e+37 }
 0x35b   :  { %v341_v13 = vpop.eup %340 }
 0x35c   :  { %v275_v14 = vmul.f32 %v341_v13, %v270_v11  ;;  %v272_v15 = vpop.xlane.xlu1 %271  ;;  %vm280_vm0 = vweird.f32 %v341_v13 }
 0x35d   :  { %v273_v16 = vsub.f32 %v272_v15, %v270_v11  ;;  %vm281_vm4 = vmor %vm279_vm2, %vm280_vm0 }
 0x35e   :  { %v276_v17 = vsub.f32 1.0, %v275_v14 }
 0x35f   :  { %342 = vrcp.f32 %v273_v16  ;;  %v299_v23 = vand.u32 2147483648, %v273_v16  ;;  %v297_v26 = vand.u32 2147483647, %v273_v16  ;;  %vm293_vm5 = vweird.f32 %v273_v16 }
 0x360   :  { %v277_v18 = vmul.f32 %v341_v13, %v276_v17 }
 0x361   :  { %v300_v30 = vor.u32 1.1754944e-38, %v299_v23  ;;  %vm298_vm8 = vcmp.eq.f32.partialorder %v297_v26, 8.507059e+37 }
 0x362   :  { %v278_v12 = vadd.f32 %v341_v13, %v277_v18 }
 0x364   :  { %v282_v27 = vsel %vm281_vm4, %v341_v13, %v278_v12 }
 0x365   :  { %v343_v19 = vpop.eup %342  ;;  %v287_v32 = vsel %vm284_vm7, %v286_v29, %v282_v27 }
 0x366   :  { %v289_v20 = vmul.f32 %v343_v19, %v273_v16  ;;  %vm294_vm3 = vweird.f32 %v343_v19 }
 0x367   :  { %vm295_vm6 = vmor %vm293_vm5, %vm294_vm3 }
 0x368   :  { %v290_v21 = vsub.f32 1.0, %v289_v20 }
 0x36a   :  { %v291_v25 = vmul.f32 %v343_v19, %v290_v21 }
 0x36c   :  { %v292_v28 = vadd.f32 %v343_v19, %v291_v25 }
 0x36e   :  { %v296_v31 = vsel %vm295_vm6, %v343_v19, %v292_v28 }
 0x36f   :  { %v301_v33 = vsel %vm298_vm8, %v300_v30, %v296_v31 }
 0x370   :  { %v302_v34 = vsel %vm254_vm15, %v287_v32, %v301_v33 }
 0x371   :  { %v303_v35 = vmul.f32 %v302_v34, %v267_v6 }
 0x373   :  { %v305_v36 = vsel %vm90_vm1, %v303_v35, 0.0 }
 0x374   :  { %306 = vst [vmem:[%s431_s2] sm:$0xff] %v305_v36 }
 0x375   :  { %311 = vsyncpa [#allocation3], 1 }

</bundles_post_ra>
